<compile_context>
chip_gen: v5e
topology: v5e:2x2
jax: 0.10.0
libtpu: 0.0.40
codegen_flags: <defaults>
</compile_context>

<pallas_src>
import math
import functools

import jax
import jax.numpy as jnp
from jax.experimental import pallas as pl
from jax.experimental.pallas import tpu as pltpu


# ---------------------------------------------------------------------------
# pe table construction (glue, matches the torch __init__ exactly)
# ---------------------------------------------------------------------------
def build_positional_encoding(max_len: int, d_model: int, dtype=jnp.float32):
    position = jnp.arange(0, max_len, dtype=jnp.float32)[:, None]          # (L, 1)
    div_term = jnp.exp(
        jnp.arange(0, d_model, 2, dtype=jnp.float32) * -(math.log(10000.0) / d_model)
    )                                                                       # (D/2,)
    angles = position * div_term                                            # (L, D/2)
    pe = jnp.zeros((max_len, d_model), dtype=jnp.float32)
    pe = pe.at[:, 0::2].set(jnp.sin(angles))
    pe = pe.at[:, 1::2].set(jnp.cos(angles))
    return pe.astype(dtype)


# ---------------------------------------------------------------------------
# Pallas kernel: y = dropout(x + pe)   on a lane-dense (rows, S*D) view
# ---------------------------------------------------------------------------
def _pos_enc_kernel(seed_ref, x_ref, pe_ref, o_ref, *,
                    dropout_p, training, tile_b, tile_l, total_l):
    # x_ref / o_ref: (tile_b, tile_l); pe_ref: (1, tile_l) broadcast over rows.
    y = x_ref[...] + pe_ref[...]          # pe already in x.dtype (cast hoisted)

    if training and dropout_p > 0.0:
        if dropout_p >= 1.0:
            y = jnp.zeros_like(y)
        else:
            # Portable counter-based PRNG (lowbias32 finalizer): works on TPU
            # Mosaic and in interpret mode (no pltpu.prng_seed).
            l_idx = pl.program_id(0)
            b_idx = pl.program_id(1)
            rows = jax.lax.broadcasted_iota(jnp.int32, y.shape, 0) + b_idx * tile_b
            cols = jax.lax.broadcasted_iota(jnp.int32, y.shape, 1) + l_idx * tile_l
            flat = (rows * total_l + cols).astype(jnp.uint32)   # global element id
            seed = seed_ref[0].astype(jnp.uint32)

            h = flat ^ (seed * jnp.uint32(0x9E3779B9))
            h = (h ^ (h >> 16)) * jnp.uint32(0x7FEB352D)
            h = (h ^ (h >> 15)) * jnp.uint32(0x846CA68B)
            h = h ^ (h >> 16)
            r = (h & jnp.uint32(0x00FFFFFF)).astype(jnp.int32)  # uniform in [0, 2^24)

            threshold = int(round(dropout_p * float(1 << 24)))
            keep = r >= jnp.int32(threshold)                    # P(keep) = 1 - p
            scale = jnp.asarray(1.0 / (1.0 - dropout_p), dtype=y.dtype)
            y = y * (keep.astype(y.dtype) * scale)              # inverted dropout

    o_ref[...] = y.astype(o_ref.dtype)


def _choose_tiles(batch, flat_len, itemsize):
    # Sublane (row) tile: full batch if small, else the 8-sublane granule.
    tb = batch if batch <= 8 else 8
    # Lane tile: keep lane-dense (multiple of 128), target ~1 MiB per block.
    if flat_len <= 128 or flat_len % 128 != 0:
        tl = flat_len
    else:
        target_bytes = 1 << 20
        tl = (target_bytes // max(1, tb * itemsize)) // 128 * 128
        tl = max(128, min(flat_len, tl))
    return tb, tl


def positional_encoding_forward(x, pe_full, *, dropout_p=0.1, training=False, seed=0):
    """x: (B, S, D).  pe_full: (max_len, D).  Returns dropout(x + pe[:S])."""
    B, S, D = x.shape
    # Glue: slice pe[:S] and cast ONCE to x.dtype (hoisted out of the kernel).
    pe = pe_full[:S, :].astype(x.dtype)

    L = S * D
    x2 = x.reshape(B, L)          # lane-dense 2-D view (last dim multiple of 128)
    pe2 = pe.reshape(1, L)

    itemsize = jnp.dtype(x.dtype).itemsize
    tb, tl = _choose_tiles(B, L, itemsize)
    grid = (pl.cdiv(L, tl), pl.cdiv(B, tb))   # L outer -> pe block resident over b

    seed_arr = jnp.array([seed], dtype=jnp.int32)
    kernel = functools.partial(
        _pos_enc_kernel,
        dropout_p=float(dropout_p), training=bool(training),
        tile_b=tb, tile_l=tl, total_l=L)

    y2 = pl.pallas_call(
        kernel,
        out_shape=jax.ShapeDtypeStruct((B, L), x.dtype),
        grid_spec=pltpu.PrefetchScalarGridSpec(
            num_scalar_prefetch=1,
            grid=grid,
            in_specs=[
                pl.BlockSpec((tb, tl), lambda l, b, seed: (b, l)),   # x tile
                pl.BlockSpec((1, tl), lambda l, b, seed: (0, l)),    # pe (row-bcast)
            ],
            out_specs=pl.BlockSpec((tb, tl), lambda l, b, seed: (b, l)),
        ),
        compiler_params=pltpu.CompilerParams(
            dimension_semantics=("parallel", "parallel"),
        ),
    )(seed_arr, x2, pe2)

    return y2.reshape(B, S, D)


# ---------------------------------------------------------------------------
# main
# ---------------------------------------------------------------------------
if __name__ == "__main__":
    key = jax.random.PRNGKey(0)

    B, S, D = 2, 8, 32
    max_len = 64
    dropout_p = 0.1

    x = jax.random.normal(key, (B, S, D), dtype=jnp.float32)
    pe_full = build_positional_encoding(max_len, D)

    # eval-mode forward (dropout is identity) — exact reference check
    y_eval = positional_encoding_forward(
        x, pe_full, dropout_p=dropout_p, training=False
    )
    y_eval = jax.block_until_ready(y_eval)

    y_ref = x + pe_full[None, :S, :]
    assert y_eval.shape == (B, S, D)
    assert jnp.allclose(y_eval, y_ref, atol=1e-6, rtol=1e-6), "eval-mode mismatch"

    # training-mode forward (in-kernel inverted dropout, deterministic seed)
    y_train = positional_encoding_forward(
        x, pe_full, dropout_p=dropout_p, training=True, seed=1234
    )
    y_train = jax.block_until_ready(y_train)
    assert y_train.shape == (B, S, D)
    # dropped entries are exactly zero; kept entries equal (x+pe)/(1-p)
    kept = y_train != 0.0
    assert jnp.allclose(
        jnp.where(kept, y_train, 0.0),
        jnp.where(kept, y_ref / (1.0 - dropout_p), 0.0),
        atol=1e-5, rtol=1e-5,
    ), "training-mode dropout scaling mismatch"
    n_drop = int(jnp.sum(~kept))
    assert 0 < n_drop < (B * S * D) // 2, "dropout rate implausible"

    print("KERNEL_OK")
</pallas_src>

<mosaic_0001>
module attributes {stable_mosaic.version = 11 : i64} {
  func.func @_pos_enc_kernel(%arg0: i32, %arg1: i32, %arg2: memref<1xi32, #tpu.memory_space<smem>>, %arg3: memref<2x256xf32, #tpu.memory_space<vmem>>, %arg4: memref<1x256xf32, #tpu.memory_space<vmem>>, %arg5: memref<2x256xf32, #tpu.memory_space<vmem>>) attributes {dimension_semantics = [#tpu.dimension_semantics<parallel>, #tpu.dimension_semantics<parallel>], iteration_bounds = array<i64: 1, 1>, scalar_prefetch = 1 : i64, scratch_operands = 0 : i64, tpu.core_type = #tpu.core_type<tc>, window_params = [{transform_indices = @transform_0, window_bounds = array<i64: 2, 256>}, {transform_indices = @transform_1, window_bounds = array<i64: 1, 256>}, {transform_indices = @transform_2, window_bounds = array<i64: 2, 256>}]} {
    %c0 = arith.constant 0 : index
    %c0_0 = arith.constant 0 : index
    %0 = vector.load %arg3[%c0, %c0_0] : memref<2x256xf32, #tpu.memory_space<vmem>>, vector<2x256xf32>
    %c0_1 = arith.constant 0 : index
    %c0_2 = arith.constant 0 : index
    %1 = vector.load %arg4[%c0_1, %c0_2] : memref<1x256xf32, #tpu.memory_space<vmem>>, vector<1x256xf32>
    %2 = vector.broadcast %1 : vector<1x256xf32> to vector<2x256xf32>
    %3 = arith.addf %0, %2 : vector<2x256xf32>
    %c0_3 = arith.constant 0 : index
    %c0_4 = arith.constant 0 : index
    %4 = vector.load %arg5[%c0_3, %c0_4] : memref<2x256xf32, #tpu.memory_space<vmem>>, vector<2x256xf32>
    tpu.vector_store %arg5[%c0_3, %c0_4], %3 {strides = array<i32>} : memref<2x256xf32, #tpu.memory_space<vmem>>, vector<2x256xf32>,
    return
  }
  func.func @transform_0(%arg0: i32, %arg1: i32, %arg2: memref<1xi32, #tpu.memory_space<smem>>) -> (i32, i32) {
    %c0_i32 = arith.constant 0 : i32
    return %arg1, %arg0 : i32, i32
  }
  func.func @transform_1(%arg0: i32, %arg1: i32, %arg2: memref<1xi32, #tpu.memory_space<smem>>) -> (i32, i32) {
    %c0_i32 = arith.constant 0 : i32
    %c0_i32_0 = arith.constant 0 : i32
    return %c0_i32, %arg0 : i32, i32
  }
  func.func @transform_2(%arg0: i32, %arg1: i32, %arg2: memref<1xi32, #tpu.memory_space<smem>>) -> (i32, i32) {
    %c0_i32 = arith.constant 0 : i32
    return %arg1, %arg0 : i32, i32
  }
}

</mosaic_0001>

<bundles_post_ra>
// kernel: tpu_custom_call.1
= control target key start
LH: loop header
LB: loop body
LE: loop exit
PB: predicated region body
PF: predicated region fallthrough
CT: control target
= control target key end

     0   :  { %9 = vsyncpa [#allocation5], 0  ;;  %s141_s0 = inlined_call_operand.<no memory space> [shape: s32[1], index: 0, kind: input, shape index: {}]   ;;  %s142_s1 = inlined_call_operand.hbm [shape: f32[2,256], index: 1, kind: input, shape index: {}]   ;;  %s143_s2 = inlined_call_operand.vmem [shape: f32[1,256], index: 2, kind: input, shape index: {}]   ;;  %s144_s3 = inlined_call_operand.hbm [shape: f32[2,256], index: 3, kind: output, shape index: {}]  }
   0x1   :  { %10 = vsyncpa [#allocation6], 0  ;;  %s16_s14 = sshll.u32 %s142_s1, 4  ;;  %s110_s15 = smov [#allocation4]   ;;  %s17_s14 = int_to_ptr.hbm [resolvable:$true] %s16_s14 }
   0x2   :  { %s18_s16 = sshll.u32 %s110_s15, 4  ;;  %s19_s16 = int_to_ptr.vmem [resolvable:$true] %s18_s16 }
   0x3   :  { %21 = dma.hbm_to_vmem [thread:$0]  %s17_s14, 64, %s19_s16, [#allocation5]  }
   0x4   :  { %106 = dma.done.wait [#allocation5], 64  }
   0x5   :  { %107 = vsyncadd [#allocation5], 4294967232  ;;  %v29_v0 = vld [vmem:[%s143_s2] sm:$0x3]  ;;  %vm34_vm0 = vcmask 1041408   ;;  %s111_s18 = smov [#allocation7]  }
   0x6   :  { %v31_v1 = vperm.slane %v29_v0, 0  ;;  %v32_v2 = vperm.slane %v29_v0, 1  ;;  %v28_v3 = vld [vmem:[#allocation4] sm:$0xf]  ;;  %s44_s19 = sshll.u32 %s111_s18, 4  ;;  %s46_s21 = sshll.u32 %s144_s3, 4  ;;  %s45_s19 = int_to_ptr.vmem [resolvable:$true] %s44_s19  ;;  %s47_s21 = int_to_ptr.hbm [resolvable:$true] %s46_s21 }
   0x8   :  { %v33_v4 = vrot.slane %v32_v2, 6 }
   0xa   :  { %v35_v5 = vsel %vm34_vm0, %v31_v1, %v33_v4 }
   0xb   :  { %v37_v6 = vadd.f32 %v35_v5, %v28_v3 }
   0xd   :  { %38 = vst [vmem:[#allocation7] sm:$0xf] %v37_v6 }
   0xe   :  { %49 = dma.vmem_to_hbm [thread:$0]  %s45_s19, 64, %s47_s21, [#allocation6]  }
   0xf   :  { %108 = dma.done.wait [#allocation6], 64  }
  0x10   :  { %109 = vsyncadd [#allocation6], 4294967232 }
  0x11   :  { %54 = vsyncpa [#allocation5], 1 }
  0x12   :  { %55 = vsyncpa [#allocation6], 1 }

</bundles_post_ra>
